<compile_context>
chip_gen: v7x
topology: tpu7x:2x2x1
jax: 0.10.0
libtpu: 0.0.40
codegen_flags: <defaults>
</compile_context>

<pallas_src>
import functools
import math

import jax
import jax.numpy as jnp
from jax.experimental import pallas as pl
from jax.experimental.pallas import tpu as pltpu


# Safe fallbacks (valid on every generation, incl. v7x's 64 MiB physical VMEM).
_DEFAULT_TILE_BYTES = 2 * 1024 * 1024
_DEFAULT_VMEM_LIMIT = 32 * 1024 * 1024
_MAX_TB = 32   # cap on the static in-kernel unroll over (b, h) slabs


def _device_budgets():
    """Generation-aware (tile_target_bytes, vmem_limit_bytes)."""
    try:
        info = pltpu.get_tpu_info()
        vmem = getattr(info, "vmem_capacity_bytes", None)
    except Exception:   # unknown backend / interpret mode: use safe defaults
        vmem = None
    if vmem is None:
        return _DEFAULT_TILE_BYTES, _DEFAULT_VMEM_LIMIT
    if vmem >= 100 * 1024 * 1024:                 # v5e / v6e: 128 MiB physical
        return 4 * 1024 * 1024, 64 * 1024 * 1024
    return 2 * 1024 * 1024, 32 * 1024 * 1024      # v7x: 64 MiB physical


def _rope_kernel(t_ref, cos_ref, sin_ref, o_ref):
    """t_ref/o_ref: (TB, TS, C); cos_ref/sin_ref: (TS, C).

    C is the seq-folded lane dim; every contiguous D-wide chunk of a row is one
    head_dim rotation. sin_ref carries the rotate_half sign folded in
    (even lanes: -sin, odd lanes: +sin):

        out = t * cos + where(lane even, t[lane+1], t[lane-1]) * sin_signed
    """
    cos = cos_ref[...].astype(jnp.float32)      # (TS, C), hoisted out of the TB loop
    sin_s = sin_ref[...].astype(jnp.float32)
    lanes = cos.shape[-1]

    # Parity mask from a single (1, C) strip (broadcast along sublanes is cheap)
    # instead of a full-tile iota.
    lane = jax.lax.broadcasted_iota(jnp.int32, (1, lanes), 1)
    is_even = (lane & 1) == 0

    for b in range(t_ref.shape[0]):             # static unroll over TB slabs
        t = t_ref[b].astype(jnp.float32)        # (TS, C); bf16 stays bf16 on the wire
        # Neighbor lanes via XLU rolls (np.roll semantics; positive shift/axis).
        x_prev = pltpu.roll(t, shift=1, axis=1)           # t[lane-1]
        x_next = pltpu.roll(t, shift=lanes - 1, axis=1)   # t[lane+1]
        rot = jnp.where(is_even, x_next, x_prev)
        o_ref[b] = (t * cos + rot * sin_s).astype(o_ref.dtype)


def make_lang_inv_freq(dim, theta=10000.0, theta_rescale_factor=1.0):
    # RotaryEmbedding.__init__ ('lang' branch), deterministic buffer.
    theta = theta * theta_rescale_factor ** (dim / (dim - 2))
    exps = jnp.arange(0, dim, 2, dtype=jnp.float32)[: dim // 2] / dim
    return 1.0 / (theta ** exps)   # (dim//2,)


def _fold_factor(S, D):
    """Smallest k with (k*D) % 128 == 0 that divides S (lane-dense fold)."""
    k0 = 128 // math.gcd(D, 128)
    if k0 == 1:
        return 1
    k = k0
    while k <= S:
        if S % k == 0:
            return k
        k += k0
    # TODO(synk): pad the lane dim to a x128 multiple instead of this
    # lane-sparse (masked-store) fallback when S admits no fold factor.
    return 1


def _choose_blocking(N, S2, C, itemsize, target_bytes):
    """Return (TB, TS): (b,h)-slabs per block and folded-seq rows per block."""
    row_bytes = C * itemsize
    target_rows = max(8, target_bytes // row_bytes)

    # Prefer tiling the folded-seq axis: keeps the outer 'parallel' grid axis
    # multi-step (megacore) and the per-block table footprint small.
    if S2 > target_rows:
        divs8 = [d for d in range(8, S2, 8) if S2 % d == 0]   # proper x8 divisors
        if divs8:
            fits = [d for d in divs8 if d <= target_rows]
            return 1, (max(fits) if fits else min(divs8))
        # S2 has no x8 proper divisor -> fall through with a full-seq block.

    # Seq axis fits in one block: aggregate TB whole (b, h) slabs per step.
    tb_cap = max(1, min(target_rows // max(S2, 1), _MAX_TB))
    divs = [d for d in range(1, N + 1) if N % d == 0]
    fits = [d for d in divs if d <= tb_cap]
    tb = max(fits) if fits else 1
    # Keep a few steps on the (now 'parallel') N axis: v7x megacore + pipeline depth.
    while tb > 1 and N // tb < min(4, N):
        tb = max(d for d in divs if d < tb)
    return tb, S2


@functools.partial(
    jax.jit,
    static_argnames=("offset", "interpolate_factor", "tile_target_bytes"))
def rotate_queries_or_keys(t, inv_freq, offset=0, interpolate_factor=1.0,
                           tile_target_bytes=None):
    """t: (B, H, S, D) float32/bfloat16; inv_freq: (D//2,). Returns rotated t."""
    B, H, S, D = t.shape
    assert D % 2 == 0 and D == 2 * inv_freq.shape[0], \
        "full-dim rotation assumed (rot_dim == head_dim)"

    tile_bytes, vmem_limit = _device_budgets()
    if tile_target_bytes is not None:
        tile_bytes = tile_target_bytes

    # RotaryEmbedding.get_seq_pos + forward(): freqs table, then interleaved
    # repeat '... n -> ... (n r)', r=2  ==  jnp.repeat(axis=-1).
    pos = (jnp.arange(S, dtype=jnp.float32) + offset) / interpolate_factor
    freqs = jnp.repeat(pos[:, None] * inv_freq[None, :].astype(jnp.float32),
                       2, axis=-1)                       # (S, D)
    cos_tab = jnp.cos(freqs)
    # Fold the rotate_half sign into sin: even lanes -> -sin, odd lanes -> +sin.
    sign = jnp.tile(jnp.asarray([-1.0, 1.0], jnp.float32), D // 2)
    sin_tab = jnp.sin(freqs) * sign
    # bf16 inputs -> bf16 tables (halves table DMA/VMEM); math stays fp32 in-kernel.
    tab_dtype = jnp.bfloat16 if t.dtype == jnp.bfloat16 else jnp.float32
    cos_tab = cos_tab.astype(tab_dtype)
    sin_tab = sin_tab.astype(tab_dtype)

    N = B * H
    k = _fold_factor(S, D)
    S2, C = S // k, k * D

    t3 = t.reshape(N, S2, C)          # row-major reshapes: free metadata changes
    cos2 = cos_tab.reshape(S2, C)
    sin2 = sin_tab.reshape(S2, C)

    itemsize = jnp.dtype(t.dtype).itemsize
    TB, TS = _choose_blocking(N, S2, C, itemsize, tile_bytes)
    n_s, n_n = S2 // TS, N // TB

    # Folded-seq axis OUTER, N axis INNER: the table block index is constant
    # across the inner loop, so Pallas keeps cos/sin resident in VMEM (one full
    # table pass per call instead of one per (b, h) slab).
    grid = (n_s, n_n)
    t_map = lambda j, i: (i, j, 0)
    tbl_map = lambda j, i: (j, 0)
    if n_s > 1:
        dim_sem = ("parallel", "arbitrary")
    else:
        # Single seq block: table index is globally constant, so let megacore
        # split the N axis instead.
        dim_sem = ("arbitrary", "parallel")

    out3 = pl.pallas_call(
        _rope_kernel,
        out_shape=jax.ShapeDtypeStruct((N, S2, C), t.dtype),
        grid_spec=pltpu.PrefetchScalarGridSpec(
            num_scalar_prefetch=0,
            grid=grid,
            in_specs=[
                pl.BlockSpec((TB, TS, C), t_map),
                pl.BlockSpec((TS, C), tbl_map),
                pl.BlockSpec((TS, C), tbl_map),
            ],
            out_specs=pl.BlockSpec((TB, TS, C), t_map),
        ),
        compiler_params=pltpu.CompilerParams(
            dimension_semantics=dim_sem,
            vmem_limit_bytes=vmem_limit,
        ),
    )(t3, cos2, sin2)

    return out3.reshape(B, H, S, D)


def _reference_rotate(t, inv_freq, offset=0, interpolate_factor=1.0):
    # Pure-JAX mirror of apply_rotary_emb for verification.
    B, H, S, D = t.shape
    pos = (jnp.arange(S, dtype=jnp.float32) + offset) / interpolate_factor
    freqs = jnp.repeat(pos[:, None] * inv_freq[None, :], 2, axis=-1)   # (S, D)
    tf = t.astype(jnp.float32)
    x1 = tf[..., 0::2]
    x2 = tf[..., 1::2]
    rot = jnp.stack((-x2, x1), axis=-1).reshape(tf.shape)
    return (tf * jnp.cos(freqs) + rot * jnp.sin(freqs)).astype(t.dtype)


if __name__ == "__main__":
    # Small shapes: batch=2, heads=4, seq=8, head_dim=32 (full-dim rotary).
    B, H, S, D = 2, 4, 8, 32
    key = jax.random.PRNGKey(0)
    t = jax.random.normal(key, (B, H, S, D), dtype=jnp.float32)
    inv_freq = make_lang_inv_freq(D)   # deterministic 'lang' buffer, (D//2,)

    out = jax.block_until_ready(
        rotate_queries_or_keys(t, inv_freq, offset=0, interpolate_factor=1.0))
    ref = _reference_rotate(t, inv_freq)
    assert out.shape == t.shape and out.dtype == t.dtype
    assert jnp.allclose(out, ref, atol=1e-5, rtol=1e-5), "fp32 mismatch"

    # Exercise the reordered multi-block path (seq OUTER, N INNER) with a tiny
    # tile target so n_s_blocks > 1 and table residency is actually in play.
    t_a = jax.random.normal(jax.random.PRNGKey(1), (2, 4, 128, 64), jnp.float32)
    inv_freq_a = make_lang_inv_freq(64)
    out_a = jax.block_until_ready(
        rotate_queries_or_keys(t_a, inv_freq_a, offset=3, tile_target_bytes=4096))
    ref_a = _reference_rotate(t_a, inv_freq_a, offset=3)
    assert jnp.allclose(out_a, ref_a, atol=1e-4, rtol=1e-4), "tiled mismatch"

    # bf16 I/O: loads/stores and tables stay bf16, compute upcasts to fp32.
    t_b = t.astype(jnp.bfloat16)
    out_b = jax.block_until_ready(rotate_queries_or_keys(t_b, inv_freq))
    ref_b = _reference_rotate(t_b, inv_freq)
    assert out_b.dtype == jnp.bfloat16
    assert jnp.allclose(out_b.astype(jnp.float32), ref_b.astype(jnp.float32),
                        atol=3e-2, rtol=3e-2), "bf16 mismatch"

    print("KERNEL_OK")
</pallas_src>

<mosaic_0001>
module attributes {stable_mosaic.version = 11 : i64} {
  func.func @_rope_kernel(%arg0: i32, %arg1: i32, %arg2: memref<2x2x128xf32, #tpu.memory_space<vmem>>, %arg3: memref<2x128xf32, #tpu.memory_space<vmem>>, %arg4: memref<2x128xf32, #tpu.memory_space<vmem>>, %arg5: memref<2x2x128xf32, #tpu.memory_space<vmem>>) attributes {dimension_semantics = [#tpu.dimension_semantics<arbitrary>, #tpu.dimension_semantics<parallel>], iteration_bounds = array<i64: 1, 4>, scalar_prefetch = 0 : i64, scratch_operands = 0 : i64, tpu.core_type = #tpu.core_type<tc>, window_params = [{transform_indices = @transform_0, window_bounds = array<i64: 2, 2, 128>}, {transform_indices = @transform_1, window_bounds = array<i64: 2, 128>}, {transform_indices = @transform_2, window_bounds = array<i64: 2, 128>}, {transform_indices = @transform_3, window_bounds = array<i64: 2, 2, 128>}]} {
    %c0 = arith.constant 0 : index
    %c0_0 = arith.constant 0 : index
    %0 = vector.load %arg3[%c0, %c0_0] : memref<2x128xf32, #tpu.memory_space<vmem>>, vector<2x128xf32>
    %c0_1 = arith.constant 0 : index
    %c0_2 = arith.constant 0 : index
    %1 = vector.load %arg4[%c0_1, %c0_2] : memref<2x128xf32, #tpu.memory_space<vmem>>, vector<2x128xf32>
    %2 = tpu.iota {dimensions = array<i32: 1>} : vector<1x128xi32>
    %c1_i32 = arith.constant 1 : i32
    %3 = vector.broadcast %c1_i32 : i32 to vector<1x128xi32>
    %4 = arith.andi %2, %3 : vector<1x128xi32>
    %c0_i32 = arith.constant 0 : i32
    %5 = vector.broadcast %c0_i32 : i32 to vector<1x128xi32>
    %6 = arith.cmpi eq, %4, %5 : vector<1x128xi32>
    %c0_3 = arith.constant 0 : index
    %c0_4 = arith.constant 0 : index
    %c0_5 = arith.constant 0 : index
    %7 = vector.load %arg2[%c0_3, %c0_4, %c0_5] : memref<2x2x128xf32, #tpu.memory_space<vmem>>, vector<1x2x128xf32>
    %8 = vector.shape_cast %7 : vector<1x2x128xf32> to vector<2x128xf32>
    %c1_i32_6 = arith.constant 1 : i32
    %9 = tpu.dynamic_rotate %8 by %c1_i32_6 dim 1 : vector<2x128xf32>, i32 -> vector<2x128xf32>
    %c127_i32 = arith.constant 127 : i32
    %10 = tpu.dynamic_rotate %8 by %c127_i32 dim 1 : vector<2x128xf32>, i32 -> vector<2x128xf32>
    %11 = vector.shape_cast %6 : vector<1x128xi1> to vector<1x128xi1>
    %12 = vector.broadcast %11 : vector<1x128xi1> to vector<2x128xi1>
    %13 = arith.select %12, %10, %9 : vector<2x128xi1>, vector<2x128xf32>
    %14 = arith.mulf %8, %0 : vector<2x128xf32>
    %15 = arith.mulf %13, %1 : vector<2x128xf32>
    %16 = arith.addf %14, %15 : vector<2x128xf32>
    %c0_7 = arith.constant 0 : index
    %c0_8 = arith.constant 0 : index
    %c0_9 = arith.constant 0 : index
    %17 = vector.load %arg5[%c0_7, %c0_8, %c0_9] : memref<2x2x128xf32, #tpu.memory_space<vmem>>, vector<1x2x128xf32>
    %18 = vector.shape_cast %17 : vector<1x2x128xf32> to vector<2x128xf32>
    %19 = vector.shape_cast %16 : vector<2x128xf32> to vector<1x2x128xf32>
    tpu.vector_store %arg5[%c0_7, %c0_8, %c0_9], %19 {strides = array<i32>} : memref<2x2x128xf32, #tpu.memory_space<vmem>>, vector<1x2x128xf32>,
    %c1 = arith.constant 1 : index
    %c0_10 = arith.constant 0 : index
    %c0_11 = arith.constant 0 : index
    %20 = vector.load %arg2[%c1, %c0_10, %c0_11] : memref<2x2x128xf32, #tpu.memory_space<vmem>>, vector<1x2x128xf32>
    %21 = vector.shape_cast %20 : vector<1x2x128xf32> to vector<2x128xf32>
    %c1_i32_12 = arith.constant 1 : i32
    %22 = tpu.dynamic_rotate %21 by %c1_i32_12 dim 1 : vector<2x128xf32>, i32 -> vector<2x128xf32>
    %c127_i32_13 = arith.constant 127 : i32
    %23 = tpu.dynamic_rotate %21 by %c127_i32_13 dim 1 : vector<2x128xf32>, i32 -> vector<2x128xf32>
    %24 = vector.shape_cast %6 : vector<1x128xi1> to vector<1x128xi1>
    %25 = vector.broadcast %24 : vector<1x128xi1> to vector<2x128xi1>
    %26 = arith.select %25, %23, %22 : vector<2x128xi1>, vector<2x128xf32>
    %27 = arith.mulf %21, %0 : vector<2x128xf32>
    %28 = arith.mulf %26, %1 : vector<2x128xf32>
    %29 = arith.addf %27, %28 : vector<2x128xf32>
    %c1_14 = arith.constant 1 : index
    %c0_15 = arith.constant 0 : index
    %c0_16 = arith.constant 0 : index
    %30 = vector.load %arg5[%c1_14, %c0_15, %c0_16] : memref<2x2x128xf32, #tpu.memory_space<vmem>>, vector<1x2x128xf32>
    %31 = vector.shape_cast %30 : vector<1x2x128xf32> to vector<2x128xf32>
    %32 = vector.shape_cast %29 : vector<2x128xf32> to vector<1x2x128xf32>
    tpu.vector_store %arg5[%c1_14, %c0_15, %c0_16], %32 {strides = array<i32>} : memref<2x2x128xf32, #tpu.memory_space<vmem>>, vector<1x2x128xf32>,
    return
  }
  func.func @transform_0(%arg0: i32, %arg1: i32) -> (i32, i32, i32) {
    %c0_i32 = arith.constant 0 : i32
    %c0_i32_0 = arith.constant 0 : i32
    return %arg1, %arg0, %c0_i32 : i32, i32, i32
  }
  func.func @transform_1(%arg0: i32, %arg1: i32) -> (i32, i32) {
    %c0_i32 = arith.constant 0 : i32
    %c0_i32_0 = arith.constant 0 : i32
    return %arg0, %c0_i32 : i32, i32
  }
  func.func @transform_2(%arg0: i32, %arg1: i32) -> (i32, i32) {
    %c0_i32 = arith.constant 0 : i32
    %c0_i32_0 = arith.constant 0 : i32
    return %arg0, %c0_i32 : i32, i32
  }
  func.func @transform_3(%arg0: i32, %arg1: i32) -> (i32, i32, i32) {
    %c0_i32 = arith.constant 0 : i32
    %c0_i32_0 = arith.constant 0 : i32
    return %arg1, %arg0, %c0_i32 : i32, i32, i32
  }
}

</mosaic_0001>

<bundles_post_ra>
// kernel: tile.6
= control target key start
LH: loop header
LB: loop body
LE: loop exit
PB: predicated region body
PF: predicated region fallthrough
CT: control target
= control target key end

     0   :  { %s28_s0 = inlined_call_operand.vmem [shape: f32[2], index: 0, kind: input, shape index: {}]   ;;  %s29_s1 = inlined_call_operand.vmem [shape: f32[16,2], index: 1, kind: output, shape index: {}]  }
   0x1   :  { %v4_v0 = vld [vmem:[%s28_s0] ss:$0 sm:$0xff] }
   0x2   :  { %5 = vst [vmem:[%s29_s1] sm:$0xff] %v4_v0  ;;  %8 = vst [vmem:[%s29_s1 + $0x8] sm:$0xff] %v4_v0 }

// kernel: mul.19
= control target key start
LH: loop header
LB: loop body
LE: loop exit
PB: predicated region body
PF: predicated region fallthrough
CT: control target
= control target key end

     0   :  { %s131_s10 = smov 30   ;;  %s132_s11 = smov 26   ;;  %vm3_vm0 = vcmask 15360   ;;  %vm9_vm1 = vcmask 261360   ;;  %vm15_vm2 = vcmask 244960   ;;  %vm21_vm3 = vcmask 228560   ;;  %s207_s0 = inlined_call_operand.vmem [shape: f32[16,2], index: 0, kind: input, shape index: {}]   ;;  %s208_s1 = inlined_call_operand.vmem [shape: f32[32], index: 1, kind: output, shape index: {}]  }
   0x1   :  { %v101_v0 = vld [vmem:[%s207_s0 + $0xf] sm:$0x1]   ;;  %v103_v1 = vld [vmem:[%s207_s0 + $0xd] sm:$0x1]   ;;  %v102_v2 = vld [vmem:[%s207_s0 + $0xe] sm:$0x1]  }
   0x2   :  { %7 = vrot.lane.b32.xlu0 %v101_v0, %s131_s10  ;;  %19 = vrot.lane.b32.xlu1 %v103_v1, %s132_s11  ;;  %v104_v3 = vld [vmem:[%s207_s0 + $0xc] sm:$0x1]   ;;  %s133_s16 = smov 28   ;;  %s134_s17 = smov 24   ;;  %v105_v4 = vld [vmem:[%s207_s0 + $0xb] sm:$0x1]  }
   0x3   :  { %v106_v5 = vld [vmem:[%s207_s0 + $0xa] sm:$0x1]   ;;  %v2_v6 = vld [vmem:[%s207_s0] sm:$0x1]   ;;  %s135_s24 = smov 22   ;;  %s136_s25 = smov 20  }
   0x4   :  { %4 = vst.msk [vmem:[#allocation0] sm:$0x1] %vm3_vm0, %v2_v6   ;;  %v107_v7 = vld [vmem:[%s207_s0 + $0x9] sm:$0x1]   ;;  %v108_v8 = vld [vmem:[%s207_s0 + $0x8] sm:$0x1]  }
   0x5   :  { %s137_s30 = smov 18   ;;  %s138_s2 = smov 16   ;;  %v109_v9 = vld [vmem:[%s207_s0 + $0x7] sm:$0x1]   ;;  %v110_v10 = vld [vmem:[%s207_s0 + $0x6] sm:$0x1]  }
   0x6   :  { %13 = vrot.lane.b32.xlu0 %v102_v2, %s133_s16  ;;  %25 = vrot.lane.b32.xlu1 %v104_v3, %s134_s17  ;;  %s139_s7 = smov 14   ;;  %s140_s8 = smov 12   ;;  %v111_v11 = vld [vmem:[%s207_s0 + $0x5] sm:$0x1]   ;;  %v112_v12 = vld [vmem:[%s207_s0 + $0x4] sm:$0x1]  }
   0x7   :  { %s141_s13 = smov 10   ;;  %s142_s14 = smov 8   ;;  %v113_v13 = vld [vmem:[%s207_s0 + $0x3] sm:$0x1]   ;;  %v114_v14 = vld [vmem:[%s207_s0 + $0x2] sm:$0x1]  }
   0x8   :  { %s143_s19 = smov 6   ;;  %s144_s20 = smov 4   ;;  %v115_v15 = vld [vmem:[%s207_s0 + $0x1] sm:$0x1]   ;;  %vm27_vm4 = vcmask 212160   ;;  %vm33_vm5 = vcmask 195760  }
   0x9   :  { %s145_s0 = smov 2   ;;  %vm39_vm6 = vcmask 179360   ;;  %vm45_vm7 = vcmask 162960   ;;  %vm51_vm8 = vcmask 146560   ;;  %vm57_vm9 = vcmask 130160  }
   0xa   :  { %31 = vrot.lane.b32.xlu0 %v105_v4, %s135_s24  ;;  %37 = vrot.lane.b32.xlu1 %v106_v5, %s136_s25  ;;  %vm63_vm10 = vcmask 113760   ;;  %vm69_vm11 = vcmask 97360   ;;  %vm75_vm12 = vcmask 80960   ;;  %vm81_vm13 = vcmask 64560  }
   0xb   :  { %vm87_vm14 = vcmask 48160   ;;  %vm93_vm15 = vcmask 31760  }
   0xe   :  { %43 = vrot.lane.b32.xlu0 %v107_v7, %s137_s30  ;;  %49 = vrot.lane.b32.xlu1 %v108_v8, %s138_s2 }
  0x12   :  { %55 = vrot.lane.b32.xlu0 %v109_v9, %s139_s7  ;;  %61 = vrot.lane.b32.xlu1 %v110_v10, %s140_s8 }
  0x16   :  { %67 = vrot.lane.b32.xlu0 %v111_v11, %s141_s13  ;;  %73 = vrot.lane.b32.xlu1 %v112_v12, %s142_s14 }
  0x1a   :  { %79 = vrot.lane.b32.xlu0 %v113_v13, %s143_s19  ;;  %85 = vrot.lane.b32.xlu1 %v114_v14, %s144_s20 }
  0x1e   :  { %91 = vrot.lane.b32.xlu0 %v115_v15, %s145_s0 }
  0x74   :  { %v8_v16 = vpop.permute.xlu0 %7   ;;  %v20_v17 = vpop.permute.xlu1 %19  }
  0x75   :  { %10 = vst.msk [vmem:[#allocation0] sm:$0x1] %vm9_vm1, %v8_v16  }
  0x78   :  { %v14_v18 = vpop.permute.xlu0 %13   ;;  %v26_v19 = vpop.permute.xlu1 %25  }
  0x79   :  { %16 = vst.msk [vmem:[#allocation0] sm:$0x1] %vm15_vm2, %v14_v18  }
  0x7a   :  { %22 = vst.msk [vmem:[#allocation0] sm:$0x1] %vm21_vm3, %v20_v17  }
  0x7b   :  { %28 = vst.msk [vmem:[#allocation0] sm:$0x1] %vm27_vm4, %v26_v19  }
  0x7c   :  { %v32_v20 = vpop.permute.xlu0 %31   ;;  %v38_v21 = vpop.permute.xlu1 %37  }
  0x7d   :  { %34 = vst.msk [vmem:[#allocation0] sm:$0x1] %vm33_vm5, %v32_v20  }
  0x7e   :  { %40 = vst.msk [vmem:[#allocation0] sm:$0x1] %vm39_vm6, %v38_v21  }
  0x80   :  { %v44_v22 = vpop.permute.xlu0 %43   ;;  %v50_v23 = vpop.permute.xlu1 %49  }
  0x81   :  { %46 = vst.msk [vmem:[#allocation0] sm:$0x1] %vm45_vm7, %v44_v22  }
  0x82   :  { %52 = vst.msk [vmem:[#allocation0] sm:$0x1] %vm51_vm8, %v50_v23  }
  0x84   :  { %v56_v24 = vpop.permute.xlu0 %55   ;;  %v62_v25 = vpop.permute.xlu1 %61  }
  0x85   :  { %58 = vst.msk [vmem:[#allocation0] sm:$0x1] %vm57_vm9, %v56_v24  }
  0x86   :  { %64 = vst.msk [vmem:[#allocation0] sm:$0x1] %vm63_vm10, %v62_v25  }
  0x88   :  { %v68_v26 = vpop.permute.xlu0 %67   ;;  %v74_v27 = vpop.permute.xlu1 %73  }
  0x89   :  { %70 = vst.msk [vmem:[#allocation0] sm:$0x1] %vm69_vm11, %v68_v26  }
  0x8a   :  { %76 = vst.msk [vmem:[#allocation0] sm:$0x1] %vm75_vm12, %v74_v27  }
  0x8c   :  { %v80_v28 = vpop.permute.xlu0 %79   ;;  %v86_v29 = vpop.permute.xlu1 %85  }
  0x8d   :  { %82 = vst.msk [vmem:[#allocation0] sm:$0x1] %vm81_vm13, %v80_v28  }
  0x8e   :  { %88 = vst.msk [vmem:[#allocation0] sm:$0x1] %vm87_vm14, %v86_v29  }
  0x90   :  { %v92_v30 = vpop.permute.xlu0 %91  }
  0x91   :  { %94 = vst.msk [vmem:[#allocation0] sm:$0x1] %vm93_vm15, %v92_v30  }
  0x98   :  { %v98_v31 = vld [vmem:[#allocation0] sm:$0x1] }
  0x99   :  { %100 = vst [vmem:[%s208_s1] sm:$0x1] %v98_v31 }

// kernel: rotate_queries_or_keys.1
= control target key start
LH: loop header
LB: loop body
LE: loop exit
PB: predicated region body
PF: predicated region fallthrough
CT: control target
= control target key end

     0   :  { %s464_s12 = smov 0   ;;  %s466_s13 = smov 0   ;;  %s503_s0 = inlined_call_operand.vmem [shape: f32[8,2,128], index: 0, kind: input, shape index: {}]   ;;  %s504_s1 = inlined_call_operand.vmem [shape: f32[2,128], index: 1, kind: input, shape index: {}]   ;;  %s505_s2 = inlined_call_operand.vmem [shape: f32[2,128], index: 2, kind: input, shape index: {}]   ;;  %s506_s3 = inlined_call_operand.vmem [shape: f32[8,2,128], index: 3, kind: output, shape index: {}]  }
   0x1   :  { %s468_s14 = smov 0  }
   0x2 LB: > { %s22_s15 = sadd.s32 1, %s436_s13  ;;  %p383_p0 = scmp.ge.s32.totalorder %s440_s14, 1  ;;  %s440_s14 = sphi %s468_s14, %s13_s14   ;;  %s436_s13 = sphi %s466_s13, %s508_s13   ;;  %s432_s12 = sphi %s464_s12, %s507_s12  }
   0x3   : > { %p23_p1 = scmp.ge.s32.totalorder %s22_s15, 4  ;;  %p175_p2 = scmp.lt.s32.totalorder %s440_s14, 5 }
   0x5   : > { %s510_s15 = smov (%p23_p1, %s22_s15), 0  ;;  %p176_p3 = pnand %p383_p0, %p175_p2 }
   0x6   : > { %s384_s16 = sshll.u32 (!%p176_p3), %s432_s12, 1  ;;  %s442_s21 = smov (!%p176_p3), 1   ;;  %v241_v2 = vlaneseq (!%p176_p3)  ;;  %v239_v7 = vld [vmem:[%s504_s1] sm:$0x3] (!%p176_p3) }
   0x7   : > { %179 = sbr.rel (%p176_p3) target bundleno = 143 (0x8f), region = 32  ;;  %p214_p4 = scmp.lt.s32.totalorder (!%p176_p3), %s384_s16, 7  ;;  %v240_v8 = vld [vmem:[%s505_s2] sm:$0x3] (!%p176_p3) }
   0x8   : > { %s443_s22 = smov (!%p176_p3), 127   ;;  %v242_v3 = vand.u32 (!%p176_p3), 127, %v241_v2 }
   0xa   : > { %v243_v4 = vand.u32 (!%p176_p3), 1, %v242_v3 }
   0xc   : > { %vm244_vm0 = vcmp.eq.s32.totalorder (!%p176_p3), %v243_v4, 0 }
   0xe   : > { %s512_s16 = smov (!%p214_p4, %s384_s16), 7 }
   0xf   : > { %s385_s17 = sshll.u32 %s512_s16, 1 }
  0x10   : > { %s220_s20 = scalar_lea.vmem %s503_s0, %s385_s17  ;;  %s237_s29 = scalar_lea.vmem %s506_s3, %s385_s17 }
  0x11   : > { %v388_v0 = vld [vmem:[%s220_s20 + $0x2] sm:$0x3]  ;;  %v245_v1 = vld [vmem:[%s220_s20] sm:$0x3] }
  0x12   : > { %259 = vrot.lane.b32.xlu1 %v388_v0, %s442_s21  ;;  %246 = vrot.lane.b32.xlu0 %v245_v1, %s442_s21  ;;  %v264_v9 = vmul.f32 %v388_v0, %v239_v7  ;;  %v253_v10 = vmul.f32 %v245_v1, %v239_v7 }
  0x16   : > { %261 = vrot.lane.b32.xlu1 %v388_v0, %s443_s22  ;;  %248 = vrot.lane.b32.xlu0 %v245_v1, %s443_s22 }
  0x84   : > { %v260_v5 = vpop.permute.xlu1 %259  ;;  %v247_v6 = vpop.permute.xlu0 %246 }
  0x88   : > { %v262_v11 = vpop.permute.xlu1 %261  ;;  %v249_v12 = vpop.permute.xlu0 %248 }
  0x89   : > { %v263_v13 = vsel %vm244_vm0, %v262_v11, %v260_v5  ;;  %v252_v14 = vsel %vm244_vm0, %v249_v12, %v247_v6 }
  0x8a   : > { %v265_v15 = vmul.f32 %v263_v13, %v240_v8  ;;  %v254_v16 = vmul.f32 %v252_v14, %v240_v8 }
  0x8c   : > { %v266_v17 = vadd.f32 %v265_v15, %v264_v9  ;;  %v255_v18 = vadd.f32 %v254_v16, %v253_v10 }
  0x8e   : > { %256 = vst [vmem:[%s237_s29] sm:$0x3] %v255_v18  ;;  %389 = vst [vmem:[%s237_s29 + $0x2] sm:$0x3] %v266_v17 }
  0x8f PF: > { %s13_s14 = sadd.s32 1, %s440_s14   ;;  %s507_s12 = smov %s436_s13 }
  0x90   : > { %p10_p5 = scmp.ge.s32.totalorder %s13_s14, 6   ;;  %s508_s13 = smov %s510_s15 }
  0x92   :  { %12 = sbr.rel (!%p10_p5) target bundleno = 2 (0x2), region = 70 }

</bundles_post_ra>
